<compile_context>
chip_gen: v7x
topology: tpu7x:2x2x1
jax: 0.10.0
libtpu: 0.0.40
codegen_flags: <defaults>
</compile_context>

<pallas_src>
from functools import partial

import jax
import jax.numpy as jnp
from jax.experimental import pallas as pl
from jax.experimental.pallas import tpu as pltpu

ALPHA = 0.25
GAMMA = 2.0
IGNORE_INDEX = 0.0  # labels equal to this value are excluded from the loss

LANES = 128
BLOCK_ROWS = 2048   # (2048, 128) f32 tile = 1 MiB; 2 inputs x 2 buffers = 4 MiB VMEM
NCORES = 2          # leading "parallel" grid axis (sharded across TCs on v7x)


def _round_up(x, m):
    return (x + m - 1) // m * m


def _focal_loss_kernel(preds_ref, labels_ref, out_ref, sum_ref, cnt_ref, *,
                       block_rows, blocks_per_core, n_valid, ignore_index,
                       apply_index_mask):
    c = pl.program_id(0)   # "core" (parallel) axis
    j = pl.program_id(1)   # reduction (arbitrary) axis

    @pl.when(j == 0)
    def _():
        sum_ref[...] = jnp.zeros_like(sum_ref)
        cnt_ref[...] = jnp.zeros_like(cnt_ref)

    x = preds_ref[...].astype(jnp.float32)
    y = labels_ref[...].astype(jnp.float32)

    if ignore_index is not None:
        mask = y != jnp.float32(ignore_index)
    else:
        mask = jnp.ones(x.shape, dtype=jnp.bool_)

    if apply_index_mask:
        # Intended (unclamped) block index; out-of-range / ragged positions
        # are zeroed here regardless of what the clamped DMA actually read.
        b = c * blocks_per_core + j
        row_ids = jax.lax.broadcasted_iota(jnp.int32, x.shape, 0) + b * block_rows
        full_rows = n_valid // LANES
        tail = n_valid % LANES
        valid = row_ids < full_rows
        if tail:
            lane_ids = jax.lax.broadcasted_iota(jnp.int32, x.shape, 1)
            valid = valid | ((row_ids == full_rows) & (lane_ids < tail))
        mask = jnp.logical_and(mask, valid)

    # numerically-stable BCE-with-logits per element:
    #   max(x, 0) - x*y + log(1 + exp(-|x|))
    bce = jnp.maximum(x, 0.0) - x * y + jnp.log1p(jnp.exp(-jnp.abs(x)))

    # lane-resident accumulation: only a sublane-direction reduce per step.
    sum_ref[...] += jnp.sum(jnp.where(mask, bce, 0.0), axis=0, keepdims=True)
    cnt_ref[...] += jnp.sum(jnp.where(mask, 1.0, 0.0), axis=0, keepdims=True)

    @pl.when(j == pl.num_programs(1) - 1)
    def _():
        out_ref[0] = jnp.concatenate([sum_ref[...], cnt_ref[...]], axis=0)


def focal_loss(preds, labels, *, alpha=ALPHA, gamma=GAMMA,
               ignore_index=IGNORE_INDEX):
    """preds, labels: arbitrary (matching) shapes, e.g. NCHW. Returns scalar f32."""
    n = preds.size
    p_flat = preds.reshape(-1)
    l_flat = labels.reshape(-1)

    rows = pl.cdiv(n, LANES)
    pad = rows * LANES - n
    if pad:
        # Only the ragged lane tail (< 128 elems) needs padding; padded slots
        # are excluded by the in-kernel index mask.
        p_flat = jnp.pad(p_flat, (0, pad))
        l_flat = jnp.pad(l_flat, (0, pad))
    p2d = p_flat.reshape(rows, LANES)
    l2d = l_flat.reshape(rows, LANES)

    block_rows = min(BLOCK_ROWS, _round_up(rows, 8))
    nblocks = pl.cdiv(rows, block_rows)
    blocks_per_core = pl.cdiv(nblocks, NCORES)
    covered = NCORES * blocks_per_core * block_rows * LANES
    apply_index_mask = covered != n

    def in_map(c, j):
        # Keep the DMA window origin inside the array; fully-OOB blocks are
        # zeroed by the in-kernel index mask.
        return (jnp.minimum(c * blocks_per_core + j, nblocks - 1), 0)

    partials = pl.pallas_call(
        partial(_focal_loss_kernel,
                block_rows=block_rows,
                blocks_per_core=blocks_per_core,
                n_valid=n,
                ignore_index=ignore_index,
                apply_index_mask=apply_index_mask),
        out_shape=jax.ShapeDtypeStruct((NCORES, 2, LANES), jnp.float32),
        grid=(NCORES, blocks_per_core),
        in_specs=[
            pl.BlockSpec((block_rows, LANES), in_map),
            pl.BlockSpec((block_rows, LANES), in_map),
        ],
        out_specs=pl.BlockSpec((1, 2, LANES), lambda c, j: (c, 0, 0)),
        scratch_shapes=[
            pltpu.VMEM((1, LANES), jnp.float32),  # per-lane masked-BCE sum
            pltpu.VMEM((1, LANES), jnp.float32),  # per-lane mask count
        ],
        compiler_params=pltpu.CompilerParams(
            dimension_semantics=("parallel", "arbitrary")),
    )(p2d, l2d)

    # Tiny scalar epilogue (combine per-core partials + focal formula).
    total_sum = jnp.sum(partials[:, 0, :])
    total_cnt = jnp.sum(partials[:, 1, :])
    mean_bce = total_sum / total_cnt   # 0/0 -> nan, matches torch on empty mask
    logpt = -mean_bce
    pt = jnp.exp(logpt)
    omp = 1.0 - pt
    if float(gamma) == 2.0:
        focal = omp * omp              # avoids pow() NaN edge case at pt == 1
    else:
        focal = omp ** gamma
    return -focal * alpha * logpt


def _focal_loss_ref(preds, labels, *, alpha=ALPHA, gamma=GAMMA,
                    ignore_index=IGNORE_INDEX):
    """Pure-JAX reference mirroring the PyTorch module."""
    x = preds.reshape(-1).astype(jnp.float32)
    y = labels.reshape(-1).astype(jnp.float32)
    mask = y != ignore_index
    bce = jnp.maximum(x, 0.0) - x * y + jnp.log1p(jnp.exp(-jnp.abs(x)))
    mean_bce = jnp.sum(jnp.where(mask, bce, 0.0)) / jnp.sum(mask)
    logpt = -mean_bce
    pt = jnp.exp(logpt)
    return -((1.0 - pt) ** gamma) * alpha * logpt


if __name__ == "__main__":
    key = jax.random.PRNGKey(0)
    k1, k2 = jax.random.split(key)

    B, C, H, W = 2, 4, 16, 16  # NCHW, like the PyTorch module's conv-style inputs
    preds = jax.random.normal(k1, (B, C, H, W), dtype=jnp.float32)   # logits
    labels = jax.random.bernoulli(k2, p=0.5, shape=(B, C, H, W)).astype(jnp.float32)

    loss = jax.block_until_ready(focal_loss(preds, labels))
    ref = jax.block_until_ready(_focal_loss_ref(preds, labels))

    assert jnp.allclose(loss, ref, rtol=1e-5, atol=1e-6), (loss, ref)
    print("KERNEL_OK")
</pallas_src>

<mosaic_0001>
module attributes {stable_mosaic.version = 11 : i64} {
  func.func @_focal_loss_kernel(%arg0: i32, %arg1: i32, %arg2: memref<16x128xf32, #tpu.memory_space<vmem>>, %arg3: memref<16x128xf32, #tpu.memory_space<vmem>>, %arg4: memref<1x2x128xf32, #tpu.memory_space<vmem>>, %arg5: memref<1x128xf32, #tpu.memory_space<vmem>>, %arg6: memref<1x128xf32, #tpu.memory_space<vmem>>) attributes {dimension_semantics = [#tpu.dimension_semantics<parallel>, #tpu.dimension_semantics<arbitrary>], iteration_bounds = array<i64: 2, 1>, scalar_prefetch = 0 : i64, scratch_operands = 2 : i64, tpu.core_type = #tpu.core_type<tc>, window_params = [{transform_indices = @transform_0, window_bounds = array<i64: 16, 128>}, {transform_indices = @transform_1, window_bounds = array<i64: 16, 128>}, {transform_indices = @transform_2, window_bounds = array<i64: 1, 2, 128>}]} {
    %c0_i32 = arith.constant 0 : i32
    %0 = arith.cmpi eq, %arg1, %c0_i32 : i32
    %1 = arith.extui %0 : i1 to i32
    %c0_i32_0 = arith.constant 0 : i32
    %2 = arith.cmpi ne, %1, %c0_i32_0 : i32
    scf.if %2 {
      %cst_22 = arith.constant 0.000000e+00 : f32
      %44 = vector.broadcast %cst_22 : f32 to vector<1x128xf32>
      %c0_23 = arith.constant 0 : index
      %c0_24 = arith.constant 0 : index
      %45 = vector.load %arg5[%c0_23, %c0_24] : memref<1x128xf32, #tpu.memory_space<vmem>>, vector<1x128xf32>
      tpu.vector_store %arg5[%c0_23, %c0_24], %44 {strides = array<i32>} : memref<1x128xf32, #tpu.memory_space<vmem>>, vector<1x128xf32>,
      %cst_25 = arith.constant 0.000000e+00 : f32
      %46 = vector.broadcast %cst_25 : f32 to vector<1x128xf32>
      %c0_26 = arith.constant 0 : index
      %c0_27 = arith.constant 0 : index
      %47 = vector.load %arg6[%c0_26, %c0_27] : memref<1x128xf32, #tpu.memory_space<vmem>>, vector<1x128xf32>
      tpu.vector_store %arg6[%c0_26, %c0_27], %46 {strides = array<i32>} : memref<1x128xf32, #tpu.memory_space<vmem>>, vector<1x128xf32>,
    } else {
    }
    %c0 = arith.constant 0 : index
    %c0_1 = arith.constant 0 : index
    %3 = vector.load %arg2[%c0, %c0_1] : memref<16x128xf32, #tpu.memory_space<vmem>>, vector<16x128xf32>
    %c0_2 = arith.constant 0 : index
    %c0_3 = arith.constant 0 : index
    %4 = vector.load %arg3[%c0_2, %c0_3] : memref<16x128xf32, #tpu.memory_space<vmem>>, vector<16x128xf32>
    %cst = arith.constant 0.000000e+00 : f32
    %5 = vector.broadcast %cst : f32 to vector<16x128xf32>
    %6 = arith.cmpf one, %4, %5 : vector<16x128xf32>
    %c1_i32 = arith.constant 1 : i32
    %7 = arith.muli %arg0, %c1_i32 : i32
    %8 = arith.addi %7, %arg1 : i32
    %9 = tpu.iota {dimensions = array<i32: 0>} : vector<16x128xi32>
    %c16_i32 = arith.constant 16 : i32
    %10 = arith.muli %8, %c16_i32 : i32
    %11 = vector.broadcast %10 : i32 to vector<16x128xi32>
    %12 = arith.addi %9, %11 : vector<16x128xi32>
    %c16_i32_4 = arith.constant 16 : i32
    %13 = vector.broadcast %c16_i32_4 : i32 to vector<16x128xi32>
    %14 = arith.cmpi slt, %12, %13 : vector<16x128xi32>
    %15 = arith.andi %6, %14 : vector<16x128xi1>
    %cst_5 = arith.constant 0.000000e+00 : f32
    %16 = vector.broadcast %cst_5 : f32 to vector<16x128xf32>
    %17 = arith.maximumf %3, %16 : vector<16x128xf32>
    %18 = arith.mulf %3, %4 : vector<16x128xf32>
    %19 = arith.subf %17, %18 : vector<16x128xf32>
    %20 = math.absf %3 : vector<16x128xf32>
    %cst_6 = arith.constant 0.000000e+00 : f32
    %21 = vector.broadcast %cst_6 : f32 to vector<16x128xf32>
    %22 = arith.subf %21, %20 : vector<16x128xf32>
    %23 = math.exp %22 : vector<16x128xf32>
    %24 = math.log1p %23 : vector<16x128xf32>
    %25 = arith.addf %19, %24 : vector<16x128xf32>
    %c0_7 = arith.constant 0 : index
    %c0_8 = arith.constant 0 : index
    %26 = vector.load %arg5[%c0_7, %c0_8] : memref<1x128xf32, #tpu.memory_space<vmem>>, vector<1x128xf32>
    %cst_9 = arith.constant 0.000000e+00 : f32
    %27 = vector.broadcast %cst_9 : f32 to vector<16x128xf32>
    %28 = arith.select %15, %25, %27 : vector<16x128xi1>, vector<16x128xf32>
    %cst_10 = arith.constant dense<0.000000e+00> : vector<128xf32>
    %29 = vector.multi_reduction <add>, %28, %cst_10 [0] : vector<16x128xf32> to vector<128xf32>
    %30 = vector.shape_cast %29 : vector<128xf32> to vector<1x128xf32>
    %31 = arith.addf %26, %30 : vector<1x128xf32>
    %c0_11 = arith.constant 0 : index
    %c0_12 = arith.constant 0 : index
    %32 = vector.load %arg5[%c0_11, %c0_12] : memref<1x128xf32, #tpu.memory_space<vmem>>, vector<1x128xf32>
    tpu.vector_store %arg5[%c0_11, %c0_12], %31 {strides = array<i32>} : memref<1x128xf32, #tpu.memory_space<vmem>>, vector<1x128xf32>,
    %c0_13 = arith.constant 0 : index
    %c0_14 = arith.constant 0 : index
    %33 = vector.load %arg6[%c0_13, %c0_14] : memref<1x128xf32, #tpu.memory_space<vmem>>, vector<1x128xf32>
    %cst_15 = arith.constant 1.000000e+00 : f32
    %cst_16 = arith.constant 0.000000e+00 : f32
    %34 = vector.broadcast %cst_15 : f32 to vector<16x128xf32>
    %35 = vector.broadcast %cst_16 : f32 to vector<16x128xf32>
    %36 = arith.select %15, %34, %35 : vector<16x128xi1>, vector<16x128xf32>
    %cst_17 = arith.constant dense<0.000000e+00> : vector<128xf32>
    %37 = vector.multi_reduction <add>, %36, %cst_17 [0] : vector<16x128xf32> to vector<128xf32>
    %38 = vector.shape_cast %37 : vector<128xf32> to vector<1x128xf32>
    %39 = arith.addf %33, %38 : vector<1x128xf32>
    %c0_18 = arith.constant 0 : index
    %c0_19 = arith.constant 0 : index
    %40 = vector.load %arg6[%c0_18, %c0_19] : memref<1x128xf32, #tpu.memory_space<vmem>>, vector<1x128xf32>
    tpu.vector_store %arg6[%c0_18, %c0_19], %39 {strides = array<i32>} : memref<1x128xf32, #tpu.memory_space<vmem>>, vector<1x128xf32>,
    %c0_i32_20 = arith.constant 0 : i32
    %41 = arith.cmpi eq, %arg1, %c0_i32_20 : i32
    %42 = arith.extui %41 : i1 to i32
    %c0_i32_21 = arith.constant 0 : i32
    %43 = arith.cmpi ne, %42, %c0_i32_21 : i32
    scf.if %43 {
      %c0_22 = arith.constant 0 : index
      %c0_23 = arith.constant 0 : index
      %44 = vector.load %arg5[%c0_22, %c0_23] : memref<1x128xf32, #tpu.memory_space<vmem>>, vector<1x128xf32>
      %c0_24 = arith.constant 0 : index
      %c0_25 = arith.constant 0 : index
      %45 = vector.load %arg6[%c0_24, %c0_25] : memref<1x128xf32, #tpu.memory_space<vmem>>, vector<1x128xf32>
      %46 = tpu.concatenate %44, %45 in 0 : vector<1x128xf32>, vector<1x128xf32> -> vector<2x128xf32>
      %c0_26 = arith.constant 0 : index
      %c0_27 = arith.constant 0 : index
      %c0_28 = arith.constant 0 : index
      %47 = vector.load %arg4[%c0_26, %c0_27, %c0_28] : memref<1x2x128xf32, #tpu.memory_space<vmem>>, vector<1x2x128xf32>
      %48 = vector.shape_cast %47 : vector<1x2x128xf32> to vector<2x128xf32>
      %49 = vector.shape_cast %46 : vector<2x128xf32> to vector<1x2x128xf32>
      tpu.vector_store %arg4[%c0_26, %c0_27, %c0_28], %49 {strides = array<i32>} : memref<1x2x128xf32, #tpu.memory_space<vmem>>, vector<1x2x128xf32>,
    } else {
    }
    return
  }
  func.func @transform_0(%arg0: i32, %arg1: i32) -> (i32, i32) {
    %c1_i32 = arith.constant 1 : i32
    %0 = arith.muli %arg0, %c1_i32 : i32
    %1 = arith.addi %0, %arg1 : i32
    %c0_i32 = arith.constant 0 : i32
    %2 = arith.minsi %1, %c0_i32 : i32
    %c0_i32_0 = arith.constant 0 : i32
    %c0_i32_1 = arith.constant 0 : i32
    return %2, %c0_i32_0 : i32, i32
  }
  func.func @transform_1(%arg0: i32, %arg1: i32) -> (i32, i32) {
    %c1_i32 = arith.constant 1 : i32
    %0 = arith.muli %arg0, %c1_i32 : i32
    %1 = arith.addi %0, %arg1 : i32
    %c0_i32 = arith.constant 0 : i32
    %2 = arith.minsi %1, %c0_i32 : i32
    %c0_i32_0 = arith.constant 0 : i32
    %c0_i32_1 = arith.constant 0 : i32
    return %2, %c0_i32_0 : i32, i32
  }
  func.func @transform_2(%arg0: i32, %arg1: i32) -> (i32, i32, i32) {
    %c0_i32 = arith.constant 0 : i32
    %c0_i32_0 = arith.constant 0 : i32
    %c0_i32_1 = arith.constant 0 : i32
    return %arg0, %c0_i32, %c0_i32_0 : i32, i32, i32
  }
}

</mosaic_0001>

<bundles_post_ra>
// kernel: tpu_custom_call.1
= control target key start
LH: loop header
LB: loop body
LE: loop exit
PB: predicated region body
PF: predicated region fallthrough
CT: control target
= control target key end

     0   :  { %7 = vsyncpa [#allocation5], 0  ;;  %s985_s0 = inlined_call_operand.hbm [shape: f32[16,128], index: 0, kind: input, shape index: {}]   ;;  %s986_s1 = inlined_call_operand.hbm [shape: f32[16,128], index: 1, kind: input, shape index: {}]   ;;  %s987_s2 = inlined_call_operand.hbm [shape: f32[2,2,128], index: 2, kind: output, shape index: {}]  }
   0x1   :  { %9 = vsyncpa [#allocation5 + $0x1], 0 }
   0x2   :  { %10 = vsyncpa [#allocation8], 0 }
   0x3   :  { %12 = vsyncpa [#allocation8 + $0x1], 0 }
   0x4   :  { %13 = vsyncpa [#allocation6], 0 }
   0x5   :  { %15 = vsyncpa [#allocation6 + $0x1], 0  ;;  %s765_s9 = smov 0   ;;  %s767_s10 = smov 0  }
   0x6   :  { %s769_s11 = smov 0   ;;  %s771_s12 = smov 0  }
   0x7   :  { %s773_s13 = smov 0   ;;  %s775_s14 = smov 0  }
   0x8   :  { %s777_s15 = smov 0   ;;  %s779_s16 = smov 0  }
   0x9 LB: > { %s451_s17 = sadd.s32 4294967295, %s742_s16   ;;  %s452_s18 = sadd.s32 4294967294, %s742_s16   ;;  %s742_s16 = sphi %s779_s16, %s21_s16   ;;  %s738_s15 = sphi %s777_s15, %s1010_s15   ;;  %s734_s14 = sphi %s775_s14, %s1009_s14   ;;  %s730_s13 = sphi %s773_s13, %s975_s13   ;;  %s726_s12 = sphi %s771_s12, %s1008_s12   ;;  %s722_s11 = sphi %s769_s11, %s1007_s11   ;;  %s718_s10 = sphi %s767_s10, %s1006_s10   ;;  %s714_s9 = sphi %s765_s9, %s1005_s9  }
   0xa   : > { %s33_s19 = sadd.s32 1, %s738_s15  ;;  %p711_p1 = scmp.ne.s32.totalorder %s730_s13, 0 }
   0xb   : > { %p35_p0 = scmp.ge.s32.totalorder %s33_s19, 2  ;;  %p54_p2 = scmp.eq.s32.totalorder %s742_s16, 0 }
   0xc   : > { %p59_p3 = scmp.ne.s32.totalorder %s730_s13, %s726_s12  ;;  %p60_p5 = scmp.eq.s32.totalorder %s451_s17, 0 }
   0xd   : > { %s1012_s19 = smov (%p35_p0, %s33_s19), 0  ;;  %p811_p4 = por %p711_p1, %p54_p2 }
   0xe   : > { %p815_p6 = por %p60_p5, %p59_p3  ;;  %s101_s22 = ssub.s32 %s738_s15, %s1012_s19 }
   0xf   : > { %p102_p7 = scmp.eq.s32.totalorder %s101_s22, 0  ;;  %s104_s23 = sadd.s32 1, %s722_s11 }
  0x10   : > { %s991_s21 = scalar_select %p815_p6, 1, 0 }
  0x11   : > { %s823_s24 = scalar_select %p102_p7, %s722_s11, %s104_s23  }
  0x12   : > { %p114_p8 = scmp.ne.s32.totalorder %s722_s11, %s718_s10  ;;  %p115_p9 = scmp.eq.s32.totalorder %s451_s17, 1 }
  0x13   : > { %p120_p10 = scmp.ne.s32.totalorder %s718_s10, %s714_s9  ;;  %p121_p11 = scmp.eq.s32.totalorder %s452_s18, 1 }
  0x14   : > { %p829_p12 = por %p115_p9, %p114_p8  ;;  %p490_p1 = scmp.lt.s32.totalorder %s742_s16, 2 }
  0x15   : > { %p834_p0 = por %p121_p11, %p120_p10  ;;  %s744_s27 = smov [#allocation4]  }
  0x16   : > { %s992_s25 = scalar_select %p829_p12, 1, 0 }
  0x17   : > { %s993_s26 = scalar_select %p834_p0, 1, 0 }
  0x18   : > { %s155_s28 = sshll.u32 %s744_s27, 4  ;;  %p841_p2 = pnand %p490_p1, %p811_p4  ;;  %s156_s28 = int_to_ptr.vmem [resolvable:$true] %s155_s28 }
  0x19   : > { %s575_s4 = scalar_lea.hbm %s985_s0, 256 }
  0x1a   : > { %p576_p3 = scmp.ne.s32.totalorder %s985_s0, %s575_s4  ;;  %p577_p5 = pneg %p841_p2 }
  0x1b   : > { %p582_p8 = scmp.lt.u32.totalorder %s575_s4, %s575_s4  ;;  %p584_p9 = scmp.lt.u32.totalorder %s575_s4, %s985_s0 }
  0x1c   : > { %p578_p7 = pnand %p577_p5, %p576_p3 }
  0x1d   : > { %p585_p10 = por %p584_p9, %p582_p8 }
  0x1e   : > { %p579_p4 = pneg %p578_p7 }
  0x20   : > { %p586_p11 = pnand %p585_p10, %p579_p4 }
  0x22   : > { %589 = shalt.err (!%p586_p11)
}
  0x23   : > { %s590_s12 = scalar_lea.vmem %s156_s28, 256  ;;  %s597_s17 = scalar_lea.vmem %s156_s28, 512 }
  0x24   : > { %p591_p1 = scmp.ne.s32.totalorder %s156_s28, %s590_s12  ;;  %p598_p12 = scmp.lt.s32.totalorder %s156_s28, %s156_s28 }
  0x25   : > { %p599_p6 = scmp.lt.s32.totalorder %s597_s17, %s590_s12 }
  0x26   : > { %p593_p13 = pnand %p591_p1, %p577_p5 }
  0x27   : > { %p600_p3 = por %p599_p6, %p598_p12 }
  0x28   : > { %p594_p0 = pneg %p593_p13 }
  0x2a   : > { %p601_p7 = pnand %p600_p3, %p594_p0 }
  0x2c   : > { %604 = shalt.err (!%p601_p7)
}
  0x2d   : > { %s745_s18 = smov 128   ;;  %s746_s20 = smov 8  }
  0x2e   : > { %482 = dma.hbm_to_vmem [thread:$0]  (!%p841_p2), %s985_s0, 256, %s156_s28, [#allocation5], %s745_s18, %s745_s18, %s746_s20  }
  0x2f   : > { %p461_p13 = scmp.ge.s32.totalorder %s742_s16, 1  ;;  %p187_p4 = scmp.lt.s32.totalorder %s742_s16, 3 }
  0x30   : > { %s747_s30 = smov [#allocation7]   ;;  %s605_s6 = scalar_lea.hbm %s986_s1, 256 }
  0x31   : > { %p872_p8 = pnand %p461_p13, %p187_p4  ;;  %s179_s3 = sshll.u32 %s747_s30, 4  ;;  %s180_s3 = int_to_ptr.vmem [resolvable:$true] %s179_s3 }
  0x32   : > { %p606_p6 = scmp.ne.s32.totalorder %s986_s1, %s605_s6  ;;  %p612_p9 = scmp.lt.u32.totalorder %s605_s6, %s605_s6 }
  0x33   : > { %s995_s27 = scalar_select %p872_p8, 1, 0 }
  0x34   : > { %p608_p12 = pnand %p606_p6, %p577_p5  ;;  %p614_p10 = scmp.lt.u32.totalorder %s605_s6, %s986_s1 }
  0x36   : > { %p609_p0 = pneg %p608_p12  ;;  %p615_p11 = por %p614_p10, %p612_p9 }
  0x38   : > { %p616_p1 = pnand %p615_p11, %p609_p0 }
  0x3a   : > { %619 = shalt.err (!%p616_p1)
}
  0x3b   : > { %s620_s17 = scalar_lea.vmem %s180_s3, 256  ;;  %s627_s22 = scalar_lea.vmem %s180_s3, 512 }
  0x3c   : > { %p621_p3 = scmp.ne.s32.totalorder %s180_s3, %s620_s17  ;;  %p628_p4 = scmp.lt.s32.totalorder %s180_s3, %s180_s3 }
  0x3d   : > { %p629_p8 = scmp.lt.s32.totalorder %s627_s22, %s620_s17 }
  0x3e   : > { %p623_p7 = pnand %p621_p3, %p577_p5 }
  0x3f   : > { %p630_p6 = por %p629_p8, %p628_p4 }
  0x40   : > { %p624_p13 = pneg %p623_p7 }
  0x42   : > { %p631_p12 = pnand %p630_p6, %p624_p13 }
  0x44   : > { %634 = shalt.err (!%p631_p12)
}
  0x45   : > { %485 = dma.hbm_to_vmem [thread:$0]  (!%p841_p2), %s986_s1, 256, %s180_s3, [#allocation8], %s745_s18, %s745_s18, %s746_s20  }
  0x46   : > { %p996_p0 = scmp.ne.s32.totalorder %s995_s27, 0 }
  0x47   : > { %s193_s4 = sand.u32 (!%p996_p0), 1, %s730_s13   ;;  %p997_p5 = scmp.ne.s32.totalorder (!%p996_p0), %s991_s21, 0 }
  0x48   : > { %191 = sbr.rel (%p996_p0) target bundleno = 160 (0xa0), region = 28  ;;  %s462_s5 = sshll.u32 (!%p996_p0), %s193_s4, 4 }
  0x49   : > { %s194_s6 = scalar_lea.sflag (!%p996_p0), [#allocation5], %s193_s4  ;;  %s197_s7 = scalar_lea.vmem (!%p996_p0), [#allocation4], %s462_s5 }
  0x4f   : > { %700 = dma.done.wait (%p997_p5), %s194_s6, 256  }
  0x50   : > { %702 = vsyncadd (%p997_p5), %s194_s6, 4294967040  ;;  %s203_s29 = scalar_lea.sflag [#allocation8], %s193_s4  ;;  %s206_s8 = scalar_lea.vmem [#allocation7], %s462_s5 }
  0x51   : > { %704 = dma.done.wait (%p997_p5), %s203_s29, 256  }
  0x52   : > { %706 = vsyncadd (%p997_p5), %s203_s29, 4294967040  ;;  %v253_v0 = vlaneseq  ;;  %s465_s18 = sshll.u32 %s734_s14, 4  ;;  %v748_v1 = vmov 0.0   ;;  %v246_v7 = vld [vmem:[%s197_s7] sm:$0xff]  ;;  %v247_v8 = vld [vmem:[%s197_s7 + $0x8] sm:$0xff]  ;;  %s229_s21 = sand.u32 1, %s718_s10  }
  0x53   : > { %244 = vst [vmem:[#allocation2] sm:$0x1] %v748_v1  ;;  %v257_v2 = vstv %s465_s18  ;;  %245 = vst [vmem:[#allocation3] sm:$0x1] %v748_v1  ;;  %v248_v9 = vld [vmem:[%s206_s8] sm:$0xff]  ;;  %v249_v10 = vld [vmem:[%s206_s8 + $0x8] sm:$0xff] }
  0x54   : > { %v254_v3 = vshrl.u32 %v253_v0, 7  ;;  %vm250_vm1 = vcmp.ne.f32.partialorder %v248_v9, 0.0  ;;  %vm251_vm3 = vcmp.ne.f32.partialorder %v249_v10, 0.0  ;;  %v270_v12 = vand.u32 2147483647, %v246_v7  ;;  %s464_s20 = sshll.u32 %s229_s21, 1 }
  0x55   : > { %v271_v14 = vand.u32 2147483647, %v247_v8  ;;  %v264_v37 = vmax.f32 %v246_v7, 0.0  ;;  %v266_v38 = vmul.f32 %v248_v9, %v246_v7  ;;  %v265_v41 = vmax.f32 %v247_v8, 0.0  ;;  %s231_s27 = scalar_lea.vmem [#allocation9], %s464_s20  ;;  %s468_s28 = sshll.u32 %s734_s14, 5 }
  0x56   : > { %v255_v4 = vadd.s32 8, %v254_v3  ;;  %v258_v5 = vadd.s32 %v257_v2, %v254_v3  ;;  %v272_v16 = vsub.f32 0.0, %v270_v12  ;;  %v267_v42 = vmul.f32 %v249_v10, %v247_v8  ;;  %s350_s3 = sshll.u32 %s231_s27, 4  ;;  %s934_s22 = scalar_lea.hbm %s987_s2, %s468_s28  ;;  %s929_s3 = int_to_ptr.vmem [resolvable:$true] %s350_s3 }
  0x57   : > { %v273_v18 = vsub.f32 0.0, %v271_v14  ;;  %v268_v46 = vsub.f32 %v264_v37, %v266_v38  ;;  %vm333_vm8 = vcmask 1040384   ;;  %s337_s23 = scalar_lea.sflag [#allocation6], %s229_s21  ;;  %s635_s30 = scalar_lea.vmem %s929_s3, 32 }
  0x58   : > { %v259_v6 = vadd.s32 %v257_v2, %v255_v4  ;;  %vm260_vm0 = vcmp.lt.s32.totalorder %v258_v5, 16  ;;  %v274_v20 = vmul.f32 1.442695, %v272_v16  ;;  %v269_v49 = vsub.f32 %v265_v41, %v267_v42  ;;  %p636_p2 = scmp.ne.s32.totalorder %s929_s3, %s635_s30  ;;  %p1002_p8 = scmp.ne.s32.totalorder %s992_s25, 0 }
  0x59   : > { %vm911_vm4 = vmand %vm250_vm1, %vm260_vm0  ;;  %v276_v21 = vmul.f32 1.442695, %v273_v18  ;;  %s749_s14 = smov [#allocation9]  }
  0x5a   : > { %vm261_vm2 = vcmp.lt.s32.totalorder %v259_v6, 16  ;;  %v311_v15 = vsel %vm911_vm4, 1.0, %v748_v1  ;;  %567 = vpow2.f32 %v274_v20  ;;  %v310_v27 = vld [vmem:[#allocation3] sm:$0x1]  ;;  %v298_v0 = vld [vmem:[#allocation2] sm:$0x1]  ;;  %p637_p9 = pnand %p636_p2, %p1002_p8 }
  0x5b   : > { %vm915_vm5 = vmand %vm251_vm3, %vm261_vm2  ;;  %569 = vpow2.f32 %v276_v21  ;;  %s639_s4 = sshll.u32 %s749_s14, 4  ;;  %s640_s4 = int_to_ptr.vmem [resolvable:$false] %s639_s4 }
  0x5c   : > { %v312_v17 = vsel %vm915_vm5, 1.0, %v748_v1  ;;  %p638_p10 = pneg %p637_p9  ;;  %s641_s5 = scalar_lea.vmem %s640_s4, 64 }
  0x5d   : > { %v313_v19 = vadd.f32 %v312_v17, %v311_v15  ;;  %p642_p11 = scmp.lt.s32.totalorder %s929_s3, %s640_s4  ;;  %p643_p1 = scmp.lt.s32.totalorder %s641_s5, %s635_s30 }
  0x5f   : > { %v314_v22 = vrot.slane %v313_v19, 4  ;;  %p644_p3 = por %p643_p1, %p642_p11 }
  0x61   : > { %v315_v23 = vadd.f32 %v314_v22, %v313_v19  ;;  %p645_p7 = pnand %p644_p3, %p638_p10 }
  0x63   : > { %v316_v24 = vrot.slane %v315_v23, 2 }
  0x64   : > { %v568_v29 = vpop.eup %567 }
  0x65   : > { %v317_v25 = vadd.f32 %v316_v24, %v315_v23  ;;  %v570_v30 = vpop.eup %569  ;;  %v278_v31 = vadd.f32 1.0, %v568_v29  ;;  %v281_v34 = vmul.f32 -0.5, %v568_v29  ;;  %v284_v39 = vand.u32 2147483647, %v568_v29 }
  0x66   : > { %v287_v33 = vadd.f32 1.0, %v570_v30  ;;  %v290_v35 = vmul.f32 -0.5, %v570_v30  ;;  %v293_v43 = vand.u32 2147483647, %v570_v30 }
  0x67   : > { %v318_v26 = vrot.slane %v317_v25, 1  ;;  %571 = vlog2.f32 %v278_v31  ;;  %v282_v36 = vadd.f32 1.0, %v281_v34  ;;  %vm285_vm6 = vcmp.lt.f32.partialorder %v284_v39, 0.0004427343 }
  0x68   : > { %573 = vlog2.f32 %v287_v33  ;;  %v291_v40 = vadd.f32 1.0, %v290_v35  ;;  %vm294_vm7 = vcmp.lt.f32.partialorder %v293_v43, 0.0004427343 }
  0x69   : > { %v319_v28 = vadd.f32 %v318_v26, %v317_v25  ;;  %v283_v44 = vmul.f32 %v568_v29, %v282_v36 }
  0x6a   : > { %v292_v47 = vmul.f32 %v570_v30, %v291_v40 }
  0x6b   : > { %v320_v32 = vadd.f32 %v319_v28, %v310_v27 }
  0x6d   : > { %321 = vst [vmem:[#allocation3] sm:$0x1] %v320_v32 }
  0x71   : > { %v572_v45 = vpop.eup %571 }
  0x72   : > { %v574_v48 = vpop.eup %573  ;;  %v280_v50 = vmul.f32 0.6931472, %v572_v45 }
  0x73   : > { %v289_v51 = vmul.f32 0.6931472, %v574_v48 }
  0x74   : > { %v286_v52 = vsel %vm285_vm6, %v283_v44, %v280_v50  ;;  %v466_v3 = vld [vmem:[#allocation3] ss:$0 sm:$0xff] }
  0x75   : > { %v295_v53 = vsel %vm294_vm7, %v292_v47, %v289_v51  ;;  %v296_v54 = vadd.f32 %v286_v52, %v268_v46 }
  0x76   : > { %v297_v55 = vadd.f32 %v295_v53, %v269_v49 }
  0x77   : > { %v299_v56 = vsel %vm911_vm4, %v296_v54, 0.0 }
  0x78   : > { %v300_v57 = vsel %vm915_vm5, %v297_v55, 0.0 }
  0x79   : > { %v301_v58 = vadd.f32 %v300_v57, %v299_v56 }
  0x7b   : > { %v302_v59 = vrot.slane %v301_v58, 4 }
  0x7d   : > { %v303_v60 = vadd.f32 %v302_v59, %v301_v58 }
  0x7f   : > { %v304_v61 = vrot.slane %v303_v60, 2 }
  0x81   : > { %v305_v62 = vadd.f32 %v304_v61, %v303_v60 }
  0x83   : > { %v306_v63 = vrot.slane %v305_v62, 1 }
  0x85   : > { %v307_v1 = vadd.f32 %v306_v63, %v305_v62 }
  0x87   : > { %v308_v2 = vadd.f32 %v307_v1, %v298_v0 }
  0x89   : > { %309 = vst [vmem:[#allocation2] sm:$0x1] %v308_v2 }
  0x90   : > { %v325_v4 = vld [vmem:[#allocation2] sm:$0x1] }
  0x91   : > { %v334_v5 = vsel %vm333_vm8, %v325_v4, %v466_v3 }
  0x92   : > { %335 = vst [vmem:[%s231_s27] sm:$0x3] %v334_v5 }
  0x93   : > { %648 = shalt.err (!%p645_p7)
}
  0x94   : > { %s649_s6 = scalar_lea.hbm %s934_s22, 32  ;;  %s653_s8 = scalar_lea.hbm %s987_s2, 64 }
  0x95   : > { %p650_p13 = scmp.ne.s32.totalorder %s934_s22, %s649_s6  ;;  %p654_p12 = scmp.lt.u32.totalorder %s934_s22, %s987_s2 }
  0x96   : > { %p655_p0 = scmp.lt.u32.totalorder %s653_s8, %s649_s6  ;;  %p657_p2 = scmp.lt.u32.totalorder %s649_s6, %s934_s22 }
  0x97   : > { %p651_p4 = pnand %p650_p13, %p1002_p8 }
  0x98   : > { %p656_p5 = por %p655_p0, %p654_p12 }
  0x99   : > { %p652_p6 = pneg %p651_p4 }
  0x9a   : > { %p658_p9 = por %p657_p2, %p656_p5 }
  0x9c   : > { %p659_p10 = pnand %p658_p9, %p652_p6 }
  0x9e   : > { %662 = shalt.err (!%p659_p10)
}
  0x9f   : > { %477 = dma.vmem_to_hbm [thread:$0]  (%p1002_p8), %s929_s3, 32, %s934_s22, %s337_s23  }
  0xa0 PF: > { %s362_s20 = sand.u32 1, %s714_s9   ;;  %p1003_p11 = scmp.ne.s32.totalorder %s993_s26, 0 }
  0xa1   : > { %p1004_p1 = scmp.ge.s32.totalorder %s742_s16, 2  ;;  %s363_s27 = scalar_lea.sflag [#allocation6], %s362_s20 }
  0xa3   : > { %p487_p3 = pnand %p1004_p1, %p1003_p11 }
  0xa5   : > { %708 = dma.done.wait (!%p487_p3), %s363_s27, 32  }
  0xa6   : > { %710 = vsyncadd (!%p487_p3), %s363_s27, 4294967264  ;;  %s21_s16 = sadd.s32 1, %s742_s16   ;;  %s1005_s9 = smov %s718_s10 }
  0xa7   : > { %p18_p7 = scmp.ge.s32.totalorder %s21_s16, 4   ;;  %s1006_s10 = smov %s722_s11 }
  0xa8   : > { %s1007_s11 = smov %s823_s24  ;;  %s1008_s12 = smov %s730_s13 }
  0xa9   : > { %s975_s13 = smov 0   ;;  %s1009_s14 = smov %s738_s15 }
  0xaa   : > { %s1010_s15 = smov %s1012_s19  ;;  %20 = sbr.rel (!%p18_p7) target bundleno = 9 (0x9), region = 94 }
  0xb1   :  { %368 = vsyncpa [#allocation5], 1 }
  0xb2   :  { %370 = vsyncpa [#allocation5 + $0x1], 1 }
  0xb3   :  { %371 = vsyncpa [#allocation8], 1 }
  0xb4   :  { %373 = vsyncpa [#allocation8 + $0x1], 1 }
  0xb5   :  { %374 = vsyncpa [#allocation6], 1 }
  0xb6   :  { %376 = vsyncpa [#allocation6 + $0x1], 1 }

</bundles_post_ra>
